<compile_context>
chip_gen: v7x
topology: tpu7x:2x2x1
jax: 0.10.0
libtpu: 0.0.40
codegen_flags: <defaults>
</compile_context>

<pallas_src>
import jax
import jax.numpy as jnp
from jax import lax
from jax.experimental import pallas as pl
from jax.experimental.pallas import tpu as pltpu

LANE = 128


def _round_up(x, m):
    return ((x + m - 1) // m) * m


# ------------------------------ Pallas kernel ------------------------------

def _make_kernel(apply_relu, has_residual):
    """out = maybe_relu(x @ w + bias [+ residual]); K accumulated on grid axis 1."""

    def kernel(*refs):
        if has_residual:
            x_ref, w_ref, b_ref, r_ref, o_ref, acc_ref = refs
        else:
            x_ref, w_ref, b_ref, o_ref, acc_ref = refs
            r_ref = None
        k = pl.program_id(1)

        @pl.when(k == 0)
        def _init():
            acc_ref[...] = jnp.zeros_like(acc_ref)

        # bf16 operands, f32 accumulation on the MXU.
        acc_ref[...] += jnp.dot(x_ref[...], w_ref[...],
                                preferred_element_type=jnp.float32)

        @pl.when(k == pl.num_programs(1) - 1)
        def _finish():
            y = acc_ref[...] + b_ref[...]               # folded BN bias (f32)
            if has_residual:
                y = y + r_ref[...].astype(jnp.float32)  # identity shortcut
            if apply_relu:
                y = jnp.maximum(y, 0.0)
            o_ref[...] = y.astype(o_ref.dtype)

    return kernel


# ------------------------------ tiling helpers ------------------------------

def _choose_tile_m(M, tm_max=512):
    """Prefer tm % 16 == 0 (bf16 packing), M % tm == 0 (no padded copy), and
    >= 4 M tiles (v7x: 2 TCs share the parallel axis; keep pipelining per core)."""
    cands = [t for t in (1024, 768, 512, 384, 256, 192, 128, 64, 32, 16)
             if t <= tm_max]
    for min_tiles in (4, 2, 1):
        for tm in cands:
            if M % tm == 0 and M // tm >= min_tiles:
                return tm, M
    if M <= tm_max:                       # small awkward M: one padded tile
        tm = _round_up(M, 16)
        return tm, tm
    tm = 256 if tm_max >= 256 else cands[0]
    return tm, _round_up(M, tm)


def _vmem_cap_bytes():
    """0.75 * physical VMEM (48 MiB on v7x, 96 MiB on v5e/v6e) as the cap."""
    try:
        cap = int(pltpu.get_tpu_info().vmem_capacity_bytes)
    except Exception:
        cap = 64 * 1024 * 1024            # assume the smallest (v7x) if unknown
    return (cap * 3) // 4


# ------------------------------- fused GEMM ---------------------------------

def fused_conv_bn(x_col, w_col, bias, *, residual=None, apply_relu,
                  out_dtype=jnp.float32, tm_max=512, tk_max=2048):
    """out = maybe_relu(x_col @ w_col + bias [+ residual]).

    x_col (M,K) bf16; w_col (K,Cout) with BN scale folded; bias (1,Cout) f32;
    residual optional (M,Cout).  Cout is lane-padded to a multiple of 128 and
    the padding sliced off the returned (M, Cout) array.
    """
    M, K = x_col.shape
    Cout = w_col.shape[1]
    Cp = _round_up(Cout, LANE)

    # Lane-pad the channel/output dim: dense vst + full MXU column utilization.
    if Cp != Cout:
        w_col = jnp.pad(w_col, ((0, 0), (0, Cp - Cout)))
        bias = jnp.pad(bias, ((0, 0), (0, Cp - Cout)))
        if residual is not None:
            residual = jnp.pad(residual, ((0, 0), (0, Cp - Cout)))

    # K tiling: keep K fully resident when it fits (full-extent block needs no
    # 128 alignment); otherwise lane-aligned tiles with K zero-padded.
    if K <= tk_max:
        tk, Kp = K, K
    else:
        tk = tk_max - (tk_max % LANE)
        Kp = _round_up(K, tk)
    if Kp != K:
        x_col = jnp.pad(x_col, ((0, 0), (0, Kp - K)))
        w_col = jnp.pad(w_col, ((0, Kp - K), (0, 0)))
    nk = Kp // tk

    # M tiling.
    tm, Mp = _choose_tile_m(M, tm_max)
    if Mp != M:
        x_col = jnp.pad(x_col, ((0, Mp - M), (0, 0)))
        if residual is not None:
            residual = jnp.pad(residual, ((0, Mp - M), (0, 0)))

    w_col = w_col.astype(x_col.dtype)
    bias = bias.astype(jnp.float32)

    in_specs = [
        pl.BlockSpec((tm, tk), lambda i, k: (i, k)),      # activation tile
        pl.BlockSpec((tk, Cp), lambda i, k: (k, 0)),      # weight tile
        pl.BlockSpec((1, Cp), lambda i, k: (0, 0)),       # folded BN bias
    ]
    args = [x_col, w_col, bias]
    if residual is not None:
        in_specs.append(pl.BlockSpec((tm, Cp), lambda i, k: (i, 0)))
        args.append(residual)

    # VMEM budget: double-buffered streams + f32 accumulator, with headroom,
    # capped at 0.75 * physical VMEM.
    bpe_in = x_col.dtype.itemsize
    bpe_out = jnp.dtype(out_dtype).itemsize
    est = 2 * (tm * tk * bpe_in + tk * Cp * bpe_in + Cp * 4 + tm * Cp * bpe_out)
    if residual is not None:
        est += 2 * tm * Cp * residual.dtype.itemsize
    est += tm * Cp * 4                                    # f32 accumulator
    vmem_limit = int(min(_vmem_cap_bytes(), max(4 * est, 16 * 1024 * 1024)))

    out = pl.pallas_call(
        _make_kernel(apply_relu, residual is not None),
        out_shape=jax.ShapeDtypeStruct((Mp, Cp), out_dtype),
        grid=(Mp // tm, nk),
        in_specs=in_specs,
        out_specs=pl.BlockSpec((tm, Cp), lambda i, k: (i, 0)),
        scratch_shapes=[pltpu.VMEM((tm, Cp), jnp.float32)],
        compiler_params=pltpu.CompilerParams(
            dimension_semantics=("parallel", "arbitrary"),
            vmem_limit_bytes=vmem_limit),
    )(*args)
    return out[:M, :Cout]


# ------------------------------ glue (JAX) ----------------------------------

def im2col(x_nhwc, kh, kw, stride, pad):
    """(N*Ho*Wo, kh*kw*C) patches in the input's dtype, plus (Ho, Wo)."""
    N, H, W, C = x_nhwc.shape
    xp = jnp.pad(x_nhwc, ((0, 0), (pad, pad), (pad, pad), (0, 0)))
    Ho = (H + 2 * pad - kh) // stride + 1
    Wo = (W + 2 * pad - kw) // stride + 1
    cols = []
    for i in range(kh):
        for j in range(kw):
            cols.append(xp[:, i:i + stride * Ho:stride, j:j + stride * Wo:stride, :])
    x_col = jnp.concatenate(cols, axis=-1)            # (N, Ho, Wo, kh*kw*C)
    return x_col.reshape(N * Ho * Wo, kh * kw * C), Ho, Wo


def conv_weight_to_col(w_oihw):
    """(Cout, Cin, kh, kw) -> (kh*kw*Cin, Cout) matching im2col ordering."""
    cout, cin, kh, kw = w_oihw.shape
    return jnp.transpose(w_oihw, (2, 3, 1, 0)).reshape(kh * kw * cin, cout)


def bn_fold(gamma, beta, mean, var, eps=1e-5):
    scale = gamma / jnp.sqrt(var + eps)
    bias = beta - mean * scale
    return scale.reshape(1, -1), bias.reshape(1, -1)


class BasicBlockPallas:
    expansion = 1

    def __init__(self, key, in_channels, out_channels, stride, k1=3, k2=3):
        self.in_channels = in_channels
        self.out_channels = out_channels
        self.stride = stride
        self.k1, self.k2 = k1, k2
        # calc_padding from the PyTorch module: k // 3 (intentional).
        self.p1, self.p2 = k1 // 3, k2 // 3

        ks = jax.random.split(key, 12)
        init = lambda k, shape, s=0.1: s * jax.random.normal(k, shape, jnp.float32)

        # conv1 / bn1
        self.w1 = init(ks[0], (out_channels, in_channels, k1, k1))
        self.bn1 = (1.0 + init(ks[1], (out_channels,)),                     # gamma
                    init(ks[2], (out_channels,)),                           # beta
                    init(ks[3], (out_channels,)),                           # running_mean
                    1.0 + 0.1 * jnp.abs(init(ks[4], (out_channels,))))      # running_var
        # conv2 / bn2
        self.w2 = init(ks[5], (out_channels, out_channels, k2, k2))
        self.bn2 = (1.0 + init(ks[6], (out_channels,)),
                    init(ks[7], (out_channels,)),
                    init(ks[8], (out_channels,)),
                    1.0 + 0.1 * jnp.abs(init(ks[9], (out_channels,))))
        # shortcut projection only when channel count changes (as in PyTorch).
        self.has_proj = in_channels != out_channels
        if self.has_proj:
            self.wsc = init(ks[10], (out_channels, in_channels, 1, 1))
            self.bnsc = (jnp.ones((out_channels,), jnp.float32),
                         jnp.zeros((out_channels,), jnp.float32),
                         0.05 * jnp.ones((out_channels,), jnp.float32),
                         1.0 + 0.1 * jnp.abs(init(ks[11], (out_channels,))))

    def __call__(self, x_nchw):
        N, Cin, H, W = x_nchw.shape
        Cout = self.out_channels
        # bf16 BEFORE im2col: the expanded patch matrix lands in HBM at 2 B/elt.
        x_nhwc = jnp.transpose(x_nchw, (0, 2, 3, 1)).astype(jnp.bfloat16)

        s1, b1 = bn_fold(*self.bn1)
        s2, b2 = bn_fold(*self.bn2)

        # ---- conv1 + bn1 + relu (fused GEMM, bf16 output for conv2) ----
        xcol1, Ho, Wo = im2col(x_nhwc, self.k1, self.k1, self.stride, self.p1)
        w1c = conv_weight_to_col(self.w1) * s1                 # BN scale folded
        y1 = fused_conv_bn(xcol1, w1c, b1, apply_relu=True,
                           out_dtype=jnp.bfloat16)
        y1_nhwc = y1.reshape(N, Ho, Wo, Cout)

        # ---- conv2 + bn2 + shortcut + relu (one fused GEMM) ----
        xcol2, _, _ = im2col(y1_nhwc, self.k2, self.k2, 1, self.p2)
        w2c = conv_weight_to_col(self.w2) * s2

        if self.has_proj:
            # 1x1 strided projection folded into the SAME GEMM: its input is
            # concatenated along K, its (scaled) weight stacked under w2, and
            # the BN biases summed -> epilogue is bias + ReLU + store only.
            ssc, bsc = bn_fold(*self.bnsc)
            xsc = x_nhwc[:, ::self.stride, ::self.stride, :]
            assert xsc.shape[1:3] == (Ho, Wo)
            xsc = xsc.reshape(N * Ho * Wo, Cin)
            wscc = conv_weight_to_col(self.wsc) * ssc
            x_in = jnp.concatenate([xcol2, xsc], axis=1)
            w_in = jnp.concatenate([w2c, wscc], axis=0)
            y2 = fused_conv_bn(x_in, w_in, b2 + bsc, apply_relu=True)
        else:
            # Identity shortcut: PyTorch requires matching shapes (stride==1).
            if self.stride != 1:
                raise ValueError("identity shortcut requires stride == 1")
            res = x_nhwc.reshape(N * Ho * Wo, Cout)            # bf16 residual
            y2 = fused_conv_bn(xcol2, w2c, b2, residual=res, apply_relu=True)

        out_nhwc = y2.reshape(N, Ho, Wo, Cout)
        return jnp.transpose(out_nhwc, (0, 3, 1, 2))           # back to NCHW


# --------------------------- pure-JAX reference -----------------------------

def _reference(block, x):
    def conv(x, w, stride, pad):
        return lax.conv_general_dilated(
            x, w, window_strides=(stride, stride),
            padding=[(pad, pad), (pad, pad)],
            dimension_numbers=("NCHW", "OIHW", "NCHW"))

    def bn(x, params, eps=1e-5):
        g, b, m, v = params
        g, b, m, v = (p.reshape(1, -1, 1, 1) for p in (g, b, m, v))
        return (x - m) / jnp.sqrt(v + eps) * g + b

    y = jax.nn.relu(bn(conv(x, block.w1, block.stride, block.p1), block.bn1))
    y = bn(conv(y, block.w2, 1, block.p2), block.bn2)
    if block.has_proj:
        sc = bn(conv(x, block.wsc, block.stride, 0), block.bnsc)
    else:
        sc = x
    return jax.nn.relu(y + sc)


def _check(out, ref):
    # bf16 activations/operands vs an f32 reference: relaxed tolerance.
    err = float(jnp.max(jnp.abs(out - ref)))
    scale = float(jnp.max(jnp.abs(ref))) + 1e-6
    assert err / scale < 5e-2, (err, scale)


# ----------------------------------- main ------------------------------------

if __name__ == "__main__":
    key = jax.random.PRNGKey(0)
    k_param, k_param2, k_x, k_x2 = jax.random.split(key, 4)

    # Config 1: projection shortcut (Cin != Cout), strided conv1.
    N, Cin, Cout, H, W, stride = 2, 4, 8, 16, 16, 2
    block = BasicBlockPallas(k_param, Cin, Cout, stride)
    x = jax.random.normal(k_x, (N, Cin, H, W), jnp.float32)
    out = jax.block_until_ready(block(x))
    ref = jax.block_until_ready(_reference(block, x))
    assert out.shape == ref.shape == (N, Cout, H // stride, W // stride)
    _check(out, ref)

    # Config 2: identity shortcut (Cin == Cout, stride 1).
    block2 = BasicBlockPallas(k_param2, 8, 8, 1)
    x2 = jax.random.normal(k_x2, (2, 8, 16, 16), jnp.float32)
    out2 = jax.block_until_ready(block2(x2))
    ref2 = jax.block_until_ready(_reference(block2, x2))
    assert out2.shape == ref2.shape == (2, 8, 16, 16)
    _check(out2, ref2)

    print("KERNEL_OK")
</pallas_src>

<mosaic_0001>
module attributes {stable_mosaic.version = 11 : i64} {
  func.func @kernel(%arg0: i32, %arg1: i32, %arg2: memref<32x36xbf16, #tpu.memory_space<vmem>>, %arg3: memref<36x128xbf16, #tpu.memory_space<vmem>>, %arg4: memref<1x128xf32, #tpu.memory_space<vmem>>, %arg5: memref<32x128xbf16, #tpu.memory_space<vmem>>, %arg6: memref<32x128xf32, #tpu.memory_space<vmem>>) attributes {dimension_semantics = [#tpu.dimension_semantics<parallel>, #tpu.dimension_semantics<arbitrary>], iteration_bounds = array<i64: 4, 1>, scalar_prefetch = 0 : i64, scratch_operands = 1 : i64, tpu.core_type = #tpu.core_type<tc>, window_params = [{transform_indices = @transform_0, window_bounds = array<i64: 32, 36>}, {transform_indices = @transform_1, window_bounds = array<i64: 36, 128>}, {pipeline_mode = #tpu.pipeline_mode<synchronous>, transform_indices = @transform_2, window_bounds = array<i64: 1, 128>}, {transform_indices = @transform_3, window_bounds = array<i64: 32, 128>}]} {
    %c0_i32 = arith.constant 0 : i32
    %0 = arith.cmpi eq, %arg1, %c0_i32 : i32
    %1 = arith.extui %0 : i1 to i32
    %c0_i32_0 = arith.constant 0 : i32
    %2 = arith.cmpi ne, %1, %c0_i32_0 : i32
    scf.if %2 {
      %cst_10 = arith.constant 0.000000e+00 : f32
      %12 = vector.broadcast %cst_10 : f32 to vector<32x128xf32>
      %c0_11 = arith.constant 0 : index
      %c0_12 = arith.constant 0 : index
      %13 = vector.load %arg6[%c0_11, %c0_12] : memref<32x128xf32, #tpu.memory_space<vmem>>, vector<32x128xf32>
      tpu.vector_store %arg6[%c0_11, %c0_12], %12 {strides = array<i32>} : memref<32x128xf32, #tpu.memory_space<vmem>>, vector<32x128xf32>,
    } else {
    }
    %c0 = arith.constant 0 : index
    %c0_1 = arith.constant 0 : index
    %3 = vector.load %arg6[%c0, %c0_1] : memref<32x128xf32, #tpu.memory_space<vmem>>, vector<32x128xf32>
    %c0_2 = arith.constant 0 : index
    %c0_3 = arith.constant 0 : index
    %4 = vector.load %arg2[%c0_2, %c0_3] : memref<32x36xbf16, #tpu.memory_space<vmem>>, vector<32x36xbf16>
    %c0_4 = arith.constant 0 : index
    %c0_5 = arith.constant 0 : index
    %5 = vector.load %arg3[%c0_4, %c0_5] : memref<36x128xbf16, #tpu.memory_space<vmem>>, vector<36x128xbf16>
    %cst = arith.constant dense<0.000000e+00> : vector<32x128xf32>
    %6 = tpu.matmul %4, %5, %cst {dimension_numbers = #tpu.dot_dimension_numbers<[1], [0], [0], [1], [0, 0, 1, 1], [], []>} : vector<32x36xbf16>, vector<36x128xbf16>, vector<32x128xf32> -> vector<32x128xf32>
    %7 = arith.addf %3, %6 : vector<32x128xf32>
    %c0_6 = arith.constant 0 : index
    %c0_7 = arith.constant 0 : index
    %8 = vector.load %arg6[%c0_6, %c0_7] : memref<32x128xf32, #tpu.memory_space<vmem>>, vector<32x128xf32>
    tpu.vector_store %arg6[%c0_6, %c0_7], %7 {strides = array<i32>} : memref<32x128xf32, #tpu.memory_space<vmem>>, vector<32x128xf32>,
    %c0_i32_8 = arith.constant 0 : i32
    %9 = arith.cmpi eq, %arg1, %c0_i32_8 : i32
    %10 = arith.extui %9 : i1 to i32
    %c0_i32_9 = arith.constant 0 : i32
    %11 = arith.cmpi ne, %10, %c0_i32_9 : i32
    scf.if %11 {
      %c0_10 = arith.constant 0 : index
      %c0_11 = arith.constant 0 : index
      %12 = vector.load %arg6[%c0_10, %c0_11] : memref<32x128xf32, #tpu.memory_space<vmem>>, vector<32x128xf32>
      %c0_12 = arith.constant 0 : index
      %c0_13 = arith.constant 0 : index
      %13 = vector.load %arg4[%c0_12, %c0_13] : memref<1x128xf32, #tpu.memory_space<vmem>>, vector<1x128xf32>
      %14 = vector.broadcast %13 : vector<1x128xf32> to vector<32x128xf32>
      %15 = arith.addf %12, %14 : vector<32x128xf32>
      %cst_14 = arith.constant 0.000000e+00 : f32
      %16 = vector.broadcast %cst_14 : f32 to vector<32x128xf32>
      %17 = arith.maximumf %15, %16 : vector<32x128xf32>
      %18 = arith.truncf %17 : vector<32x128xf32> to vector<32x128xbf16>
      %c0_15 = arith.constant 0 : index
      %c0_16 = arith.constant 0 : index
      %19 = vector.load %arg5[%c0_15, %c0_16] : memref<32x128xbf16, #tpu.memory_space<vmem>>, vector<32x128xbf16>
      tpu.vector_store %arg5[%c0_15, %c0_16], %18 {strides = array<i32>} : memref<32x128xbf16, #tpu.memory_space<vmem>>, vector<32x128xbf16>,
    } else {
    }
    return
  }
  func.func @transform_0(%arg0: i32, %arg1: i32) -> (i32, i32) {
    %c0_i32 = arith.constant 0 : i32
    return %arg0, %arg1 : i32, i32
  }
  func.func @transform_1(%arg0: i32, %arg1: i32) -> (i32, i32) {
    %c0_i32 = arith.constant 0 : i32
    %c0_i32_0 = arith.constant 0 : i32
    return %arg1, %c0_i32 : i32, i32
  }
  func.func @transform_2(%arg0: i32, %arg1: i32) -> (i32, i32) {
    %c0_i32 = arith.constant 0 : i32
    %c0_i32_0 = arith.constant 0 : i32
    %c0_i32_1 = arith.constant 0 : i32
    return %c0_i32, %c0_i32_0 : i32, i32
  }
  func.func @transform_3(%arg0: i32, %arg1: i32) -> (i32, i32) {
    %c0_i32 = arith.constant 0 : i32
    %c0_i32_0 = arith.constant 0 : i32
    return %arg0, %c0_i32 : i32, i32
  }
}

</mosaic_0001>

<bundles_post_ra>
// kernel: tpu_custom_call.1
= control target key start
LH: loop header
LB: loop body
LE: loop exit
PB: predicated region body
PF: predicated region fallthrough
CT: control target
= control target key end

     0   :  { %8 = vsyncpa [#allocation4], 0  ;;  %s825_s0 = inlined_call_operand.vmem [shape: bf16[128,36], index: 0, kind: input, shape index: {}]   ;;  %s826_s1 = inlined_call_operand.vmem [shape: bf16[36,128], index: 1, kind: input, shape index: {}]   ;;  %s827_s2 = inlined_call_operand.vmem [shape: f32[1,128], index: 2, kind: input, shape index: {}]   ;;  %s828_s3 = inlined_call_operand.hbm [shape: bf16[128,128], index: 3, kind: output, shape index: {}]  }
   0x1   :  { %10 = vsyncpa [#allocation4 + $0x1], 0  ;;  %s699_s12 = smov 0   ;;  %s701_s13 = smov 0  }
   0x2   :  { %s703_s14 = smov 0   ;;  %s705_s15 = smov 0  }
   0x3   :  { %s707_s16 = smov 0   ;;  %s709_s17 = smov 0  }
   0x4 LB: > { %s476_s18 = sadd.s32 4294967295, %s674_s17   ;;  %s477_s19 = sadd.s32 4294967294, %s674_s17   ;;  %s674_s17 = sphi %s709_s17, %s16_s17   ;;  %s670_s16 = sphi %s707_s16, %s835_s16   ;;  %s666_s15 = sphi %s705_s15, %s834_s15   ;;  %s662_s14 = sphi %s703_s14, %s833_s14   ;;  %s658_s13 = sphi %s701_s13, %s832_s13   ;;  %s654_s12 = sphi %s699_s12, %s831_s12  }
   0x5   : > { %s28_s20 = sadd.s32 1, %s670_s16  ;;  %s110_s21 = sadd.s32 1, %s662_s14 }
   0x6   : > { %p30_p0 = scmp.ge.s32.totalorder %s28_s20, 4  ;;  %p120_p1 = scmp.ne.s32.totalorder %s662_s14, %s658_s13 }
   0x7   : > { %p121_p2 = scmp.eq.s32.totalorder %s476_s18, 3  ;;  %p126_p3 = scmp.ne.s32.totalorder %s658_s13, %s654_s12 }
   0x8   : > { %s837_s20 = smov (%p30_p0, %s28_s20), 0  ;;  %p127_p5 = scmp.eq.s32.totalorder %s477_s19, 3 }
   0x9   : > { %p739_p4 = por %p121_p2, %p120_p1  ;;  %s107_s23 = ssub.s32 %s670_s16, %s837_s20 }
   0xa   : > { %p481_p6 = scmp.ge.s32.totalorder %s674_s17, 1  ;;  %p108_p7 = scmp.eq.s32.totalorder %s107_s23, 0 }
   0xb   : > { %p746_p8 = por %p127_p5, %p126_p3  ;;  %p169_p9 = scmp.lt.s32.totalorder %s674_s17, 5 }
   0xc   : > { %s752_s25 = scalar_select %p108_p7, %s662_s14, %s110_s21  }
   0xd   : > { %p170_p10 = pnand %p481_p6, %p169_p9 }
   0xe   : > { %v591_v0 = vld [vmem:[%s826_s1] sm:$0xff] (!%p170_p10)   ;;  %v592_v1 = vld [vmem:[%s826_s1 + $0x8] sm:$0xff] (!%p170_p10)   ;;  %s483_s30 = sshll.u32 (!%p170_p10), %s666_s15, 2  ;;  %v593_v2 = vld [vmem:[%s826_s1 + $0x10] ss:$0 sps:$4 sm:$0x33] (!%p170_p10)  }
   0xf   : > { %173 = sbr.rel (%p170_p10) target bundleno = 263 (0x107), region = 32  ;;  %523 = vmatprep.subr.bf16.mxu0 (!%p170_p10), %v591_v0  ;;  %p202_p11 = scmp.lt.s32.totalorder (!%p170_p10), %s483_s30, 15  ;;  %vm271_vm0 = vcmask (!%p170_p10), 1041408   ;;  %vm264_vm1 = vcmask (!%p170_p10), 293888   ;;  %v492_v6 = vld [vmem:[%s827_s2] ss:$0 sm:$0xff] (!%p170_p10) }
  0x10   : > { %524 = vmatpush3.bf16.msra.mxu0 (!%p170_p10), %v591_v0  ;;  %v273_v3 = vsel (!%p170_p10), %vm271_vm0, %v593_v2, 0  ;;  %s198_s10 = sand.u32 (!%p170_p10), 1, %s658_s13   ;;  %s506_s26 = sshll.u32 (!%p170_p10), %s666_s15, 8 }
  0x11   : > { %525 = vmatprep.subr.bf16.mxu0 (!%p170_p10), %v592_v1  ;;  %s482_s19 = sshll.u32 (!%p170_p10), %s198_s10, 4  ;;  %s777_s29 = scalar_lea.hbm (!%p170_p10), %s828_s3, %s506_s26 }
  0x12   : > { %s200_s21 = scalar_lea.vmem (!%p170_p10), [#allocation3], %s482_s19  ;;  %s676_s4 = smov (!%p170_p10), [#allocation3]  }
  0x13   : > { %s388_s23 = sshll.u32 (!%p170_p10), %s200_s21, 4  ;;  %s600_s5 = sshll.u32 (!%p170_p10), %s676_s4, 4  ;;  %s772_s23 = int_to_ptr.vmem [resolvable:$true] %s388_s23  ;;  %s601_s5 = int_to_ptr.vmem [resolvable:$false] %s600_s5 }
  0x14   : > { %526 = vmatpush3.bf16.msra.mxu0 (!%p170_p10), %v592_v1  ;;  %s596_s15 = scalar_lea.vmem (!%p170_p10), %s772_s23, 256  ;;  %p603_p1 = scmp.lt.s32.totalorder (!%p170_p10), %s772_s23, %s601_s5 }
  0x15   : > { %533 = vmatprep.subr.msk.bf16.mxu0 (!%p170_p10), %vm271_vm0, %v593_v2  ;;  %p597_p12 = scmp.ne.s32.totalorder (!%p170_p10), %s772_s23, %s596_s15 }
  0x16   : > { %s839_s30 = smov (!%p202_p11, %s483_s30), 15 }
  0x17   : > { %s484_s6 = sshll.u32 %s839_s30, 2  ;;  %s779_s30 = scalar_lea.sflag [#allocation4], %s198_s10 }
  0x18   : > { %s208_s9 = scalar_lea.vmem %s825_s0, %s484_s6  ;;  %528 = vmatpush3.bf16.msra.mxu0 %v273_v3  ;;  %p598_p13 = pnand %p597_p12, %p739_p4 }
  0x19   : > { %v594_v4 = vld [vmem:[%s208_s9] sm:$0xff]   ;;  %v595_v5 = vld [vmem:[%s208_s9 + $0x8] sm:$0xff]   ;;  %s602_s6 = scalar_lea.vmem %s601_s5, 512 }
  0x1a   : > { %529 = vmatprep.mubr.msk.bf16.mxu0 %vm264_vm1, %v594_v4  ;;  %p599_p0 = pneg %p598_p13  ;;  %p604_p2 = scmp.lt.s32.totalorder %s602_s6, %s596_s15 }
  0x1b   : > { %530 = vmatmul.mubr.msk.bf16.vlgmr.msra.gmra.mrb[0].mxu0 %vm264_vm1, %v595_v5 }
  0x1c   : > { %p605_p3 = por %p604_p2, %p603_p1 }
  0x1e   : > { %p606_p5 = pnand %p605_p3, %p599_p0 }
  0xee   : > { %v531_v7 = vpop.f32.mrb[0].mxu0 }
  0xef   : > { %v348_v8 = vadd.f32 %v531_v7, %v492_v6  ;;  %v309_v9 = vpop.f32.mrb[1].mxu0 }
  0xf0   : > { %v346_v10 = vadd.f32 %v492_v6, %v309_v9  ;;  %v532_v11 = vpop.f32.mrb[2].mxu0 }
  0xf1   : > { %v349_v12 = vadd.f32 %v532_v11, %v492_v6  ;;  %v312_v13 = vpop.f32.mrb[3].mxu0  ;;  %v352_v15 = vmax.f32 %v348_v8, 0.0 }
  0xf2   : > { %v347_v14 = vadd.f32 %v492_v6, %v312_v13  ;;  %v350_v17 = vmax.f32 %v346_v10, 0.0 }
  0xf3   : > { %v353_v16 = vmax.f32 %v349_v12, 0.0 }
  0xf4   : > { %v351_v18 = vmax.f32 %v347_v14, 0.0 }
  0xf5   : > { %v515_v19 = vpack.c.bf16 %v353_v16, %v352_v15 }
  0xf6   : > { %v510_v20 = vpack.c.bf16 %v351_v18, %v350_v17 }
  0xf7   : > { %517 = vst [vmem:[%s200_s21 + $0x8] sm:$0xff] %v515_v19  }
  0xf8   : > { %511 = vst [vmem:[%s200_s21] sm:$0xff] %v510_v20  }
  0xf9   : > { %609 = shalt.err (!%p606_p5)
}
  0xfa   : > { %s610_s7 = scalar_lea.hbm %s777_s29, 256  ;;  %s614_s10 = scalar_lea.hbm %s828_s3, 1024 }
  0xfb   : > { %p611_p6 = scmp.ne.s32.totalorder %s777_s29, %s610_s7  ;;  %p615_p10 = scmp.lt.u32.totalorder %s777_s29, %s828_s3 }
  0xfc   : > { %p616_p11 = scmp.lt.u32.totalorder %s614_s10, %s610_s7  ;;  %p618_p13 = scmp.lt.u32.totalorder %s610_s7, %s777_s29 }
  0xfd   : > { %p612_p7 = pnand %p611_p6, %p739_p4 }
  0xfe   : > { %p617_p12 = por %p616_p11, %p615_p10 }
  0xff   : > { %p613_p9 = pneg %p612_p7 }
 0x100   : > { %p619_p0 = por %p618_p13, %p617_p12 }
 0x102   : > { %p620_p1 = pnand %p619_p0, %p613_p9 }
 0x104   : > { %623 = shalt.err (!%p620_p1)
}
 0x105   : > { %s677_s19 = smov 64   ;;  %s678_s21 = smov 4  }
 0x106   : > { %534 = dma.vmem_to_hbm [thread:$0]  (%p739_p4), %s772_s23, 256, %s777_s29, %s779_s30, %s677_s19, %s677_s19, %s678_s21  }
 0x107 PF: > { %p540_p2 = scmp.ge.s32.totalorder %s674_s17, 2  ;;  %s403_s26 = sand.u32 1, %s654_s12  }
 0x108   : > { %s404_s27 = scalar_lea.sflag [#allocation4], %s403_s26 }
 0x109   : > { %p537_p3 = pnand %p540_p2, %p746_p8 }
 0x10b   : > { %649 = dma.done.wait (!%p537_p3), %s404_s27, 256  }
 0x10c   : > { %651 = vsyncadd (!%p537_p3), %s404_s27, 4294967040  ;;  %s16_s17 = sadd.s32 1, %s674_s17   ;;  %s831_s12 = smov %s658_s13 }
 0x10d   : > { %p13_p5 = scmp.ge.s32.totalorder %s16_s17, 6   ;;  %s832_s13 = smov %s662_s14 }
 0x10e   : > { %s833_s14 = smov %s752_s25  ;;  %s834_s15 = smov %s670_s16 }
 0x10f   : > { %s835_s16 = smov %s837_s20  ;;  %15 = sbr.rel (!%p13_p5) target bundleno = 4 (0x4), region = 78 }
 0x116   :  { %409 = vsyncpa [#allocation4], 1 }
 0x117   :  { %411 = vsyncpa [#allocation4 + $0x1], 1 }

</bundles_post_ra>
